<compile_context>
chip_gen: v5e
topology: v5e:2x2
jax: 0.10.0
libtpu: 0.0.40
codegen_flags: <defaults>
</compile_context>

<pallas_src>
import math

import jax
import jax.numpy as jnp
from jax.experimental import pallas as pl
from jax.experimental.pallas import tpu as pltpu


def _round_up(v, m):
    return (v + m - 1) // m * m


def _cdiv(a, b):
    return -(-a // b)


def _row_tiling(N, tm):
    """Row-tile size, #row tiles, padded row count (multiple of 8)."""
    n8 = _round_up(N, 8)
    tm = max(8, min(tm, n8))
    n_tiles = _cdiv(n8, tm)
    if n_tiles < 2 and n8 > 8:
        n_tiles = 2  # >= 2 row tiles so v7x's two TensorCores both get work
    tm = _round_up(_cdiv(n8, n_tiles), 8)
    return tm, n_tiles, tm * n_tiles


def _k_tiling(N, tk):
    """Reduction-tile size, #k tiles, padded reduction count (mult of 128)."""
    n128 = _round_up(N, 128)
    tk = max(128, min(tk, n128))
    n_tiles = _cdiv(n128, tk)
    tk = _round_up(_cdiv(n128, n_tiles), 128)
    return tk, n_tiles, tk * n_tiles


# ---------------------------------------------------------------------------
# Fused kernel: out = relu((adj @ x) @ W)
#   grid = (row_tiles, k_tiles), reduction axis last ("arbitrary").
#   The output block index is constant over k -> it stays VMEM-resident and is
#   used directly as the f32 accumulator (no scratch).
# ---------------------------------------------------------------------------
def gcn_kernel(adj_ref, x_ref, w_ref, o_ref):
    k = pl.program_id(1)

    @pl.when(k == 0)
    def _init():
        o_ref[...] = jnp.zeros_like(o_ref)

    # agg += adj_tile @ x_panel   (bf16 MXU inputs, f32 accumulation)
    o_ref[...] += jnp.dot(
        adj_ref[...].astype(jnp.bfloat16),
        x_ref[...],
        preferred_element_type=jnp.float32,
    )

    @pl.when(k == pl.num_programs(1) - 1)
    def _finalize():
        # Fused second matmul + relu on the resident accumulator tile.
        o_ref[...] = jnp.maximum(
            jnp.dot(
                o_ref[...].astype(jnp.bfloat16),
                w_ref[...],
                preferred_element_type=jnp.float32,
            ),
            0.0,
        )


def gcn_forward(x, adj, weight, *, tm=512, tk=2048):
    """relu(adj @ (x @ weight)) computed as relu((adj @ x) @ weight).

    bf16 MXU inputs, f32 accumulation, f32 output (cropped to (N, D)).
    `adj` may be the original (N, N) array (any float dtype) or an already
    padded (N_row_pad, N_k_pad) copy (bf16 or f32) cached by the caller.
    """
    N, D = x.shape
    assert weight.shape == (D, D)

    D_pad = _round_up(D, 128)  # lane-dense feature dim
    tm, n_row_tiles, N_row_pad = _row_tiling(N, tm)
    tk, n_k_tiles, N_k_pad = _k_tiling(N, tk)

    # x padded along adj's reduction axis; W padded to lane-dense square.
    x_p = jnp.zeros((N_k_pad, D_pad), jnp.bfloat16).at[:N, :D].set(
        x.astype(jnp.bfloat16))
    w_p = jnp.zeros((D_pad, D_pad), jnp.bfloat16).at[:D, :D].set(
        weight.astype(jnp.bfloat16))

    # adj: reuse as-is if already padded (cast happens in-kernel), else pad
    # once directly into bf16 (halves the dominant HBM stream).
    if adj.shape == (N_row_pad, N_k_pad):
        adj_p = adj
    else:
        assert adj.shape == (N, N)
        adj_p = jnp.zeros((N_row_pad, N_k_pad), jnp.bfloat16).at[:N, :N].set(
            adj.astype(jnp.bfloat16))

    out_p = pl.pallas_call(
        gcn_kernel,
        out_shape=jax.ShapeDtypeStruct((N_row_pad, D_pad), jnp.float32),
        grid=(n_row_tiles, n_k_tiles),
        in_specs=[
            pl.BlockSpec((tm, tk), lambda i, k: (i, k)),        # adj tile
            pl.BlockSpec((tk, D_pad), lambda i, k: (k, 0)),     # x k-panel
            pl.BlockSpec((D_pad, D_pad), lambda i, k: (0, 0)),  # W (resident)
        ],
        out_specs=pl.BlockSpec((tm, D_pad), lambda i, k: (i, 0)),
        compiler_params=pltpu.CompilerParams(
            dimension_semantics=("parallel", "arbitrary"),
            vmem_limit_bytes=32 * 1024 * 1024,
        ),
    )(adj_p, x_p, w_p)

    return out_p[:N, :D]


def glorot_init(key, in_dim, out_dim, dtype=jnp.float32):
    # Matches the typical GCN glorot_init: U(-r, r), r = sqrt(6/(in+out))
    init_range = math.sqrt(6.0 / (in_dim + out_dim))
    return jax.random.uniform(
        key, (in_dim, out_dim), dtype=dtype, minval=-init_range, maxval=init_range
    )


if __name__ == "__main__":
    key = jax.random.PRNGKey(0)
    k_x, k_adj, k_w = jax.random.split(key, 3)

    N = 16          # number of graph nodes
    input_dim = 32  # feature dimension

    x = jax.random.normal(k_x, (N, input_dim), dtype=jnp.float32)

    # Simple deterministic normalized adjacency (row-stochastic, self-loops).
    a = (jax.random.uniform(k_adj, (N, N)) > 0.7).astype(jnp.float32)
    a = a + jnp.eye(N, dtype=jnp.float32)
    adj = a / jnp.sum(a, axis=1, keepdims=True)

    weight = glorot_init(k_w, input_dim, input_dim)

    out = gcn_forward(x, adj, weight)
    jax.block_until_ready(out)
    assert out.shape == (N, input_dim)

    # Reference mimicking the fused bf16-input / f32-accumulate path:
    # relu( bf16(adj_bf @ x_bf) @ W_bf ).
    x_bf = x.astype(jnp.bfloat16).astype(jnp.float32)
    w_bf = weight.astype(jnp.bfloat16).astype(jnp.float32)
    adj_bf = adj.astype(jnp.bfloat16).astype(jnp.float32)
    agg_bf = (adj_bf @ x_bf).astype(jnp.bfloat16).astype(jnp.float32)
    ref_bf = jnp.maximum(agg_bf @ w_bf, 0.0)
    assert jnp.allclose(out, ref_bf, atol=2e-3, rtol=2e-3)

    # Sanity check vs. the full-precision reference (looser: bf16 inputs).
    ref_f32 = jnp.maximum(adj @ (x @ weight), 0.0)
    assert jnp.allclose(out, ref_f32, atol=5e-2, rtol=5e-2)

    print("KERNEL_OK")
</pallas_src>

<mosaic_0001>
module attributes {stable_mosaic.version = 11 : i64} {
  func.func @gcn_kernel(%arg0: i32, %arg1: i32, %arg2: memref<8x128xbf16, #tpu.memory_space<vmem>>, %arg3: memref<128x128xbf16, #tpu.memory_space<vmem>>, %arg4: memref<128x128xbf16, #tpu.memory_space<vmem>>, %arg5: memref<8x128xf32, #tpu.memory_space<vmem>>) attributes {dimension_semantics = [#tpu.dimension_semantics<parallel>, #tpu.dimension_semantics<arbitrary>], iteration_bounds = array<i64: 2, 1>, scalar_prefetch = 0 : i64, scratch_operands = 0 : i64, tpu.core_type = #tpu.core_type<tc>, window_params = [{transform_indices = @transform_0, window_bounds = array<i64: 8, 128>}, {transform_indices = @transform_1, window_bounds = array<i64: 128, 128>}, {pipeline_mode = #tpu.pipeline_mode<synchronous>, transform_indices = @transform_2, window_bounds = array<i64: 128, 128>}, {transform_indices = @transform_3, window_bounds = array<i64: 8, 128>}]} {
    %c0_i32 = arith.constant 0 : i32
    %0 = arith.cmpi eq, %arg1, %c0_i32 : i32
    %1 = arith.extui %0 : i1 to i32
    %c0_i32_0 = arith.constant 0 : i32
    %2 = arith.cmpi ne, %1, %c0_i32_0 : i32
    scf.if %2 {
      %cst_10 = arith.constant 0.000000e+00 : f32
      %12 = vector.broadcast %cst_10 : f32 to vector<8x128xf32>
      %c0_11 = arith.constant 0 : index
      %c0_12 = arith.constant 0 : index
      %13 = vector.load %arg5[%c0_11, %c0_12] : memref<8x128xf32, #tpu.memory_space<vmem>>, vector<8x128xf32>
      tpu.vector_store %arg5[%c0_11, %c0_12], %12 {strides = array<i32>} : memref<8x128xf32, #tpu.memory_space<vmem>>, vector<8x128xf32>,
    } else {
    }
    %c0 = arith.constant 0 : index
    %c0_1 = arith.constant 0 : index
    %3 = vector.load %arg5[%c0, %c0_1] : memref<8x128xf32, #tpu.memory_space<vmem>>, vector<8x128xf32>
    %c0_2 = arith.constant 0 : index
    %c0_3 = arith.constant 0 : index
    %4 = vector.load %arg2[%c0_2, %c0_3] : memref<8x128xbf16, #tpu.memory_space<vmem>>, vector<8x128xbf16>
    %c0_4 = arith.constant 0 : index
    %c0_5 = arith.constant 0 : index
    %5 = vector.load %arg3[%c0_4, %c0_5] : memref<128x128xbf16, #tpu.memory_space<vmem>>, vector<128x128xbf16>
    %cst = arith.constant dense<0.000000e+00> : vector<8x128xf32>
    %6 = tpu.matmul %4, %5, %cst {dimension_numbers = #tpu.dot_dimension_numbers<[1], [0], [0], [1], [0, 0, 1, 1], [], []>} : vector<8x128xbf16>, vector<128x128xbf16>, vector<8x128xf32> -> vector<8x128xf32>
    %7 = arith.addf %3, %6 : vector<8x128xf32>
    %c0_6 = arith.constant 0 : index
    %c0_7 = arith.constant 0 : index
    %8 = vector.load %arg5[%c0_6, %c0_7] : memref<8x128xf32, #tpu.memory_space<vmem>>, vector<8x128xf32>
    tpu.vector_store %arg5[%c0_6, %c0_7], %7 {strides = array<i32>} : memref<8x128xf32, #tpu.memory_space<vmem>>, vector<8x128xf32>,
    %c0_i32_8 = arith.constant 0 : i32
    %9 = arith.cmpi eq, %arg1, %c0_i32_8 : i32
    %10 = arith.extui %9 : i1 to i32
    %c0_i32_9 = arith.constant 0 : i32
    %11 = arith.cmpi ne, %10, %c0_i32_9 : i32
    scf.if %11 {
      %c0_10 = arith.constant 0 : index
      %c0_11 = arith.constant 0 : index
      %12 = vector.load %arg5[%c0_10, %c0_11] : memref<8x128xf32, #tpu.memory_space<vmem>>, vector<8x128xf32>
      %13 = arith.truncf %12 : vector<8x128xf32> to vector<8x128xbf16>
      %c0_12 = arith.constant 0 : index
      %c0_13 = arith.constant 0 : index
      %14 = vector.load %arg4[%c0_12, %c0_13] : memref<128x128xbf16, #tpu.memory_space<vmem>>, vector<128x128xbf16>
      %cst_14 = arith.constant dense<0.000000e+00> : vector<8x128xf32>
      %15 = tpu.matmul %13, %14, %cst_14 {dimension_numbers = #tpu.dot_dimension_numbers<[1], [0], [0], [1], [0, 0, 1, 1], [], []>} : vector<8x128xbf16>, vector<128x128xbf16>, vector<8x128xf32> -> vector<8x128xf32>
      %cst_15 = arith.constant 0.000000e+00 : f32
      %16 = vector.broadcast %cst_15 : f32 to vector<8x128xf32>
      %17 = arith.maximumf %15, %16 : vector<8x128xf32>
      %c0_16 = arith.constant 0 : index
      %c0_17 = arith.constant 0 : index
      %18 = vector.load %arg5[%c0_16, %c0_17] : memref<8x128xf32, #tpu.memory_space<vmem>>, vector<8x128xf32>
      tpu.vector_store %arg5[%c0_16, %c0_17], %17 {strides = array<i32>} : memref<8x128xf32, #tpu.memory_space<vmem>>, vector<8x128xf32>,
    } else {
    }
    return
  }
  func.func @transform_0(%arg0: i32, %arg1: i32) -> (i32, i32) {
    %c0_i32 = arith.constant 0 : i32
    return %arg0, %arg1 : i32, i32
  }
  func.func @transform_1(%arg0: i32, %arg1: i32) -> (i32, i32) {
    %c0_i32 = arith.constant 0 : i32
    %c0_i32_0 = arith.constant 0 : i32
    return %arg1, %c0_i32 : i32, i32
  }
  func.func @transform_2(%arg0: i32, %arg1: i32) -> (i32, i32) {
    %c0_i32 = arith.constant 0 : i32
    %c0_i32_0 = arith.constant 0 : i32
    %c0_i32_1 = arith.constant 0 : i32
    return %c0_i32, %c0_i32_0 : i32, i32
  }
  func.func @transform_3(%arg0: i32, %arg1: i32) -> (i32, i32) {
    %c0_i32 = arith.constant 0 : i32
    %c0_i32_0 = arith.constant 0 : i32
    return %arg0, %c0_i32 : i32, i32
  }
}

</mosaic_0001>

<bundles_post_ra>
// kernel: tpu_custom_call.1
= control target key start
LH: loop header
LB: loop body
LE: loop exit
PB: predicated region body
PF: predicated region fallthrough
CT: control target
= control target key end

     0   :  { %8 = vsyncpa [#allocation3], 0  ;;  %s1064_s0 = inlined_call_operand.hbm [shape: bf16[16,128], index: 0, kind: input, shape index: {}]   ;;  %s1065_s1 = inlined_call_operand.hbm [shape: bf16[128,128], index: 1, kind: input, shape index: {}]   ;;  %s1066_s2 = inlined_call_operand.hbm [shape: bf16[128,128], index: 2, kind: input, shape index: {}]   ;;  %s1067_s3 = inlined_call_operand.hbm [shape: f32[16,128], index: 3, kind: output, shape index: {}]  }
   0x1   :  { %10 = vsyncpa [#allocation3 + $0x1], 0 }
   0x2   :  { %11 = vsyncpa [#allocation6], 0 }
   0x3   :  { %12 = vsyncpa [#allocation4], 0 }
   0x4   :  { %14 = vsyncpa [#allocation4 + $0x1], 0  ;;  %s916_s12 = smov 0   ;;  %s918_s13 = smov 0  }
   0x5   :  { %s920_s14 = smov 0   ;;  %s922_s15 = smov 0  }
   0x6   :  { %s924_s16 = smov 0   ;;  %s926_s17 = smov 0  }
   0x7 LB: > { %s531_s18 = sadd.s32 4294967295, %s890_s17   ;;  %p533_p0 = scmp.ge.s32.totalorder %s890_s17, 1  ;;  %s890_s17 = sphi %s926_s17, %s20_s17   ;;  %s886_s16 = sphi %s924_s16, %s1077_s16   ;;  %s882_s15 = sphi %s922_s15, %s1076_s15   ;;  %s878_s14 = sphi %s920_s14, %s1075_s14   ;;  %s874_s13 = sphi %s918_s13, %s1074_s13   ;;  %s870_s12 = sphi %s916_s12, %s1073_s12  }
   0x8   : > { %p950_p1 = scmp.eq.s32.totalorder %s531_s18, 0  ;;  %p138_p2 = scmp.lt.s32.totalorder %s890_s17, 3 }
   0x9   : > { %s152_s22 = sshll.u32 %s1065_s1, 4  ;;  %s892_s24 = smov [#allocation5]   ;;  %s153_s22 = int_to_ptr.hbm [resolvable:$true] %s152_s22 }
   0xa   : > { %p958_p3 = pnand %p533_p0, %p138_p2  ;;  %s154_s25 = sshll.u32 %s892_s24, 4  ;;  %s155_s25 = int_to_ptr.vmem [resolvable:$true] %s154_s25 }
   0xb   : > { %p536_p6 = scmp.ge.s32.totalorder %s890_s17, 2  ;;  %s166_s28 = sshll.u32 %s1066_s2, 4  ;;  %s167_s28 = int_to_ptr.hbm [resolvable:$true] %s166_s28 }
   0xc   : > { %p640_p4 = pneg %p958_p3  ;;  %s893_s29 = smov 64  }
   0xd   : > { %s894_s30 = smov 4   ;;  %s895_s4 = smov [#allocation7]  }
   0xe   : > { %p641_p5 = pnand %p640_p4, %p950_p1  ;;  %s168_s5 = sshll.u32 %s895_s4, 4  ;;  %s169_s5 = int_to_ptr.vmem [resolvable:$true] %s168_s5 }
   0xf   : > { %s32_s6 = sadd.s32 1, %s886_s16  ;;  %s532_s7 = sadd.s32 4294967294, %s890_s17  }
  0x10   : > { %643 = dma.hbm_to_vmem [thread:$0]  (!%p641_p5), %s153_s22, 1024, %s155_s25, [#allocation6], %s893_s29, %s893_s29, %s894_s30  }
  0x11   : > { %646 = dma.hbm_to_vmem [thread:$0]  (!%p641_p5), %s167_s28, 1024, %s169_s5, [#allocation6], %s893_s29, %s893_s29, %s894_s30  }
  0x12   : > { %p34_p7 = scmp.ge.s32.totalorder %s32_s6, 2  ;;  %s41_s8 = sadd.s32 1, %s878_s14 }
  0x13   : > { %p48_p8 = scmp.ne.s32.totalorder %s878_s14, %s874_s13  ;;  %p49_p9 = scmp.eq.s32.totalorder %s890_s17, 0 }
  0x14   : > { %s1079_s6 = smov (%p34_p7, %s32_s6), 0  ;;  %p54_p10 = scmp.ne.s32.totalorder %s874_s13, %s870_s12 }
  0x15   : > { %s36_s9 = ssub.s32 %s886_s16, %s1079_s6  ;;  %p125_p11 = scmp.eq.s32.totalorder %s531_s18, 1 }
  0x16   : > { %p39_p12 = scmp.eq.s32.totalorder %s36_s9, 0  ;;  %p986_p13 = por %p950_p1, %p54_p10 }
  0x17   : > { %p990_p0 = por %p125_p11, %p48_p8  ;;  %p131_p2 = scmp.eq.s32.totalorder %s532_s7, 1 }
  0x18   : > { %s995_s20 = scalar_select %p39_p12, %s878_s14, %s41_s8  }
  0x19   : > { %p50_p4 = por %p49_p9, %p48_p8  ;;  %p997_p5 = por %p131_p2, %p54_p10 }
  0x1a   : > { %s182_s22 = sand.u32 1, %s878_s14   ;;  %s538_s18 = sshll.u32 %s886_s16, 2 }
  0x1b   : > { %p657_p7 = scmp.lt.s32.totalorder %s890_s17, 2  ;;  %s537_s24 = sshll.u32 %s182_s22, 2 }
  0x1c   : > { %s191_s27 = scalar_lea.hbm %s1064_s0, %s538_s18  ;;  %s186_s29 = scalar_lea.vmem [#allocation2], %s537_s24 }
  0x1d   : > { %s193_s28 = sshll.u32 %s191_s27, 4  ;;  %s195_s30 = sshll.u32 %s186_s29, 4  ;;  %s194_s28 = int_to_ptr.hbm [resolvable:$true] %s193_s28  ;;  %s196_s30 = int_to_ptr.vmem [resolvable:$true] %s195_s30 }
  0x1e   : > { %p648_p11 = pnand %p657_p7, %p50_p4  ;;  %s183_s4 = scalar_lea.sflag [#allocation3], %s182_s22 }
  0x1f   : > { %204 = sbr.rel (%p958_p3) target bundleno = 333 (0x14d), region = 32  ;;  %s1010_s5 = sand.u32 (!%p958_p3), 1, %s874_s13  }
  0x20   : > { %650 = dma.hbm_to_vmem [thread:$0]  (!%p648_p11), %s194_s28, 64, %s196_s30, %s183_s4  }
  0x21   : > { %s540_s7 = sshll.u32 (!%p958_p3), %s1010_s5, 2  ;;  %s207_s8 = scalar_lea.sflag (!%p958_p3), [#allocation3], %s1010_s5 }
  0x22   : > { %s1014_s9 = scalar_lea.vmem (!%p958_p3), [#allocation2], %s540_s7 }
  0x24   : > { %857 = dma.done.wait (%p986_p13), %s207_s8, 64  }
  0x25   : > { %859 = vsyncadd (%p986_p13), %s207_s8, 4294967232 }
  0x26   : > { %861 = dma.done.wait (%p950_p1), [#allocation6], 2048  }
  0x27   : > { %863 = vsyncadd (%p950_p1), [#allocation6], 4294965248  ;;  %v619_v0 = vld [vmem:[#allocation5 + $0x38] sm:$0xff]  ;;  %v618_v1 = vld [vmem:[#allocation5 + $0x30] sm:$0xff]  ;;  %s609_s19 = sshll.u32 %s882_s15, 3  ;;  %s543_s23 = sshll.u32 %s1010_s5, 3 }
  0x28   : > { %316 = vmatpush.bf16.msra.mxu0 %v619_v0  ;;  %v627_v2 = vld [vmem:[#allocation7 + $0x38] sm:$0xff]  ;;  %v626_v3 = vld [vmem:[#allocation7 + $0x30] sm:$0xff]  ;;  %v617_v4 = vld [vmem:[#allocation5 + $0x28] sm:$0xff]  ;;  %s426_s18 = scalar_lea.hbm %s1067_s3, %s609_s19  ;;  %s243_s24 = scalar_lea.vmem [#allocation8], %s543_s23 }
  0x29   : > { %400 = vmatpush.bf16.msra.mxu1 %v627_v2  ;;  %v625_v5 = vld [vmem:[#allocation7 + $0x28] sm:$0xff]  ;;  %v616_v6 = vld [vmem:[#allocation5 + $0x20] sm:$0xff]  ;;  %v615_v8 = vld [vmem:[#allocation5 + $0x18] sm:$0xff]  ;;  %s428_s25 = sshll.u32 %s243_s24, 4  ;;  %s430_s26 = sshll.u32 %s426_s18, 4  ;;  %s429_s25 = int_to_ptr.vmem [resolvable:$true] %s428_s25  ;;  %s431_s26 = int_to_ptr.hbm [resolvable:$true] %s430_s26 }
  0x2a   : > { %v624_v7 = vld [vmem:[#allocation7 + $0x20] sm:$0xff]  ;;  %v623_v9 = vld [vmem:[#allocation7 + $0x18] sm:$0xff]  ;;  %v614_v10 = vld [vmem:[#allocation5 + $0x10] sm:$0xff]  ;;  %s416_s27 = scalar_lea.sflag [#allocation4], %s1010_s5  ;;  %s818_s28 = sshra.s32 %s431_s26, 4  ;;  %s819_s28 = int_to_ptr.hbm [resolvable:$true] %s818_s28 }
  0x2b   : > { %v613_v11 = vld [vmem:[#allocation5 + $0x8] sm:$0xff]  ;;  %v612_v12 = vld [vmem:[#allocation5] sm:$0xff]  ;;  %v251_v13 = vld [vmem:[%s1014_s9] sm:$0xf]  ;;  %s820_s29 = scalar_lea.hbm %s819_s28, 8  ;;  %s824_s4 = scalar_lea.hbm %s1067_s3, 16 }
  0x2c   : > { %317 = vmatpush.bf16.msra.mxu0 %v618_v1  ;;  %v622_v14 = vld [vmem:[#allocation7 + $0x10] sm:$0xff]  ;;  %v621_v15 = vld [vmem:[#allocation7 + $0x8] sm:$0xff]  ;;  %v620_v16 = vld [vmem:[#allocation7] sm:$0xff]  ;;  %p821_p1 = scmp.ne.s32.totalorder %s819_s28, %s820_s29  ;;  %p825_p9 = scmp.lt.s32.totalorder %s819_s28, %s1067_s3 }
  0x2d   : > { %401 = vmatpush.bf16.msra.mxu1 %v626_v3  ;;  %p826_p10 = scmp.lt.s32.totalorder %s824_s4, %s820_s29 }
  0x2e   : > { %p822_p3 = pnand %p821_p1, %p990_p0 }
  0x2f   : > { %p827_p12 = por %p826_p10, %p825_p9 }
  0x30   : > { %318 = vmatpush.bf16.msra.mxu0 %v617_v4  ;;  %p823_p8 = pneg %p822_p3 }
  0x31   : > { %402 = vmatpush.bf16.msra.mxu1 %v625_v5 }
  0x32   : > { %p828_p13 = pnand %p827_p12, %p823_p8 }
  0x34   : > { %319 = vmatpush.bf16.msra.mxu0 %v616_v6 }
  0x35   : > { %403 = vmatpush.bf16.msra.mxu1 %v624_v7 }
  0x38   : > { %320 = vmatpush.bf16.msra.mxu0 %v615_v8 }
  0x39   : > { %404 = vmatpush.bf16.msra.mxu1 %v623_v9 }
  0x3c   : > { %321 = vmatpush.bf16.msra.mxu0 %v614_v10 }
  0x3d   : > { %405 = vmatpush.bf16.msra.mxu1 %v622_v14 }
  0x40   : > { %322 = vmatpush.bf16.msra.mxu0 %v613_v11 }
  0x41   : > { %406 = vmatpush.bf16.msra.mxu1 %v621_v15 }
  0x44   : > { %323 = vmatpush.bf16.msra.mxu0 %v612_v12 }
  0x45   : > { %407 = vmatpush.bf16.msra.mxu1 %v620_v16 }
  0x47   : > { %324 = vmatmul.bf16.vlgmr.msra.gmra.mxu0 %v251_v13 }
  0xc4   : > { %v325_v17 = vpop.f32.mrf.mxu0 }
  0xc5   : > { %v335_v18 = vpack.c.bf16 %v325_v17, %v325_v17 }
  0xc7   : > { %408 = vmatmul.bf16.vlgmr.msra.gmra.mxu1 %v335_v18 }
  0xcc   : > { %v327_v19 = vpop.f32.mrf.mxu0 }
 0x144   : > { %v409_v20 = vpop.f32.mrf.mxu1 }
 0x145   : > { %v413_v21 = vmax.f32 %v409_v20, 0.0 }
 0x147   : > { %414 = vst [vmem:[%s243_s24] sm:$0xff] %v413_v21 }
 0x148   : > { %831 = shalt.err (!%p828_p13)
}
 0x149   : > { %638 = dma.vmem_to_hbm [thread:$0]  (%p990_p0), %s429_s25, 128, %s431_s26, %s416_s27  }
 0x14c   : > { %v411_v22 = vpop.f32.mrf.mxu1 }
 0x14d PF: > { %s442_s5 = sand.u32 1, %s870_s12   ;;  %p652_p2 = pnand %p536_p6, %p997_p5 }
 0x14e   : > { %s443_s9 = scalar_lea.sflag [#allocation4], %s442_s5 }
 0x14f   : > { %p653_p4 = pneg %p652_p2 }
 0x151   : > { %865 = dma.done.wait (%p653_p4), %s443_s9, 128  }
 0x152   : > { %867 = vsyncadd (%p653_p4), %s443_s9, 4294967168  ;;  %s20_s17 = sadd.s32 1, %s890_s17   ;;  %s1073_s12 = smov %s874_s13 }
 0x153   : > { %p17_p7 = scmp.ge.s32.totalorder %s20_s17, 4   ;;  %s1074_s13 = smov %s878_s14 }
 0x154   : > { %s1075_s14 = smov %s995_s20  ;;  %s1076_s15 = smov %s886_s16 }
 0x155   : > { %s1077_s16 = smov %s1079_s6  ;;  %19 = sbr.rel (!%p17_p7) target bundleno = 7 (0x7), region = 94 }
 0x15a   :  { %449 = vsyncpa [#allocation3], 1 }
 0x15b   :  { %451 = vsyncpa [#allocation3 + $0x1], 1 }
 0x15c   :  { %452 = vsyncpa [#allocation6], 1 }
 0x15d   :  { %453 = vsyncpa [#allocation4], 1 }
 0x15e   :  { %455 = vsyncpa [#allocation4 + $0x1], 1 }

</bundles_post_ra>
